<compile_context>
chip_gen: v7x
topology: tpu7x:2x2x1
jax: 0.10.0
libtpu: 0.0.40
codegen_flags: <defaults>
</compile_context>

<pallas_src>
import functools

import jax
import jax.numpy as jnp
from jax.experimental import pallas as pl
from jax.experimental.pallas import tpu as pltpu


def _round_up(v, m):
    return (v + m - 1) // m * m


def _cdiv(a, b):
    return (a + b - 1) // b


def _hw_config():
    """Generation-aware VMEM / tiling constants (safe defaults off-TPU)."""
    try:
        vmem_cap = int(pltpu.get_tpu_info().vmem_capacity_bytes)
    except Exception:                                   # CPU / interpret / old JAX
        vmem_cap = 128 << 20
    small_vmem = vmem_cap <= (80 << 20)                 # v7x-class: 64 MiB per TC
    return dict(
        vmem_cap=vmem_cap,
        num_cores=2 if small_vmem else 1,               # v7x has 2 TCs per chip
        resident_weight_bytes=(24 << 20) if small_vmem else (72 << 20),
        vmem_limit_cap=min(vmem_cap - (8 << 20), 112 << 20),
        ktiled_tm=512 if small_vmem else 1024,          # streamed-weight AI = tm FLOP/B
        resident_tm=256,
    )


def _supports_pipeline_mode():
    if not hasattr(pl, "Buffered"):
        return False
    try:
        pl.BlockSpec((8, 128), lambda i: (0, 0), pipeline_mode=pl.Buffered(1))
        return True
    except TypeError:
        return False


# ------------------------------------------------------------------ kernels --
def _ffn_kernel_resident(*refs, has_mask, compute_dtype):
    """Fused MLP row tile: (tm,E) -> (tm,H) -> ReLU -> (tm,E) -> dropout."""
    if has_mask:
        x_ref, w1_ref, b1_ref, w2_ref, b2_ref, mask_ref, o_ref = refs
    else:
        x_ref, w1_ref, b1_ref, w2_ref, b2_ref, o_ref = refs
        mask_ref = None
    x = x_ref[...].astype(compute_dtype)
    h = jnp.dot(x, w1_ref[...], preferred_element_type=jnp.float32)
    h = jnp.maximum(h + b1_ref[...], 0.0)                       # f32 elementwise
    y = jnp.dot(h.astype(compute_dtype), w2_ref[...],
                preferred_element_type=jnp.float32)
    y = y + b2_ref[...]
    if mask_ref is not None:
        y = y * mask_ref[...].astype(jnp.float32)               # inverted dropout
    o_ref[...] = y.astype(o_ref.dtype)


def _ffn_kernel_ktiled(*refs, has_mask, compute_dtype):
    """Hidden-dim (K) tiled variant with an f32 VMEM accumulator."""
    if has_mask:
        x_ref, w1_ref, b1_ref, w2_ref, b2_ref, mask_ref, o_ref, acc_ref = refs
    else:
        x_ref, w1_ref, b1_ref, w2_ref, b2_ref, o_ref, acc_ref = refs
        mask_ref = None
    k = pl.program_id(1)

    @pl.when(k == 0)
    def _():
        acc_ref[...] = jnp.zeros_like(acc_ref)

    x = x_ref[...].astype(compute_dtype)
    h = jnp.dot(x, w1_ref[...], preferred_element_type=jnp.float32)
    h = jnp.maximum(h + b1_ref[...], 0.0)
    acc_ref[...] += jnp.dot(h.astype(compute_dtype), w2_ref[...],
                            preferred_element_type=jnp.float32)

    @pl.when(k == pl.num_programs(1) - 1)
    def _():
        y = acc_ref[...] + b2_ref[...]
        if mask_ref is not None:
            y = y * mask_ref[...].astype(jnp.float32)
        o_ref[...] = y.astype(o_ref.dtype)


# ------------------------------------------------------------------ wrapper --
def prepare_params(w1, b1, w2, b2, compute_dtype=jnp.bfloat16):
    """Optional one-time cast so per-call astype below is a no-op."""
    return (w1.astype(compute_dtype), b1.astype(jnp.float32),
            w2.astype(compute_dtype), b2.astype(jnp.float32))


def feed_forward(x, w1, b1, w2, b2, *, dropout_p=0.2, training=False, seed=0,
                 tm=None, tk=None, compute_dtype=jnp.bfloat16, out_dtype=None):
    """x: (..., n_embd). Returns same shape (dtype = out_dtype or x.dtype).

    w1: (n_embd, hidden), b1: (hidden,), w2: (hidden, n_embd), b2: (n_embd,)
    (PyTorch nn.Linear weights pre-transposed to (in, out)).
    """
    n_embd = x.shape[-1]
    hidden = w1.shape[1]
    assert w1.shape == (n_embd, hidden)
    assert b1.shape == (hidden,)
    assert w2.shape == (hidden, n_embd)
    assert b2.shape == (n_embd,)

    hw = _hw_config()
    orig_shape = x.shape
    out_dtype = x.dtype if out_dtype is None else out_dtype
    c_item = jnp.dtype(compute_dtype).itemsize
    out_item = jnp.dtype(out_dtype).itemsize

    x2d = x.reshape(-1, n_embd)
    M = x2d.shape[0]

    # Lane-dense feature dims (multiples of 128).  If already aligned, pass the
    # activations through untouched (native dtype; kernel casts on load).
    E_pad = _round_up(n_embd, 128)
    H_pad = _round_up(hidden, 128)
    feature_pad = (E_pad != n_embd) or (H_pad != hidden)
    if feature_pad:
        x2d = jnp.pad(x2d.astype(compute_dtype), ((0, 0), (0, E_pad - n_embd)))
    x_item = jnp.dtype(x2d.dtype).itemsize

    # Weights/biases in compute dtype (no-op if caller used prepare_params).
    w1p = w1.astype(compute_dtype)
    w2p = w2.astype(compute_dtype)
    b1p = b1.astype(jnp.float32)
    b2p = b2.astype(jnp.float32)
    if feature_pad:
        w1p = jnp.pad(w1p, ((0, E_pad - n_embd), (0, H_pad - hidden)))
        w2p = jnp.pad(w2p, ((0, H_pad - hidden), (0, E_pad - n_embd)))
        b1p = jnp.pad(b1p, (0, H_pad - hidden))
        b2p = jnp.pad(b2p, (0, E_pad - n_embd))
    b1p = b1p.reshape(1, H_pad)
    b2p = b2p.reshape(1, E_pad)

    weight_bytes = 2 * E_pad * H_pad * c_item
    single_buf_w = _supports_pipeline_mode()
    budget = hw["vmem_limit_cap"] - (4 << 20)

    has_mask = bool(training and dropout_p > 0.0)
    mask = None
    if has_mask:
        # TODO(synk): dropout mask uses jax.random (not bit-identical to
        # torch's RNG stream); in-kernel pltpu.prng_* is not portable to
        # interpret mode.
        keep = jax.random.bernoulli(jax.random.PRNGKey(seed),
                                    1.0 - dropout_p, (M, E_pad))
        mask = keep.astype(compute_dtype) * jnp.asarray(
            1.0 / (1.0 - dropout_p), compute_dtype)

    def clamp_tm(t):
        t = max(8, min(_round_up(t, 8), _round_up(M, 8)))
        # Keep both TensorCores busy on dual-core (v7x) chips.
        if hw["num_cores"] > 1 and M > 8 and _cdiv(M, t) < hw["num_cores"]:
            t = max(8, _round_up(_cdiv(M, hw["num_cores"]), 8))
        return t

    def resident_need(tm_):
        return ((1 if single_buf_w else 2) * weight_bytes
                + 2 * (E_pad + H_pad) * 4
                + 2 * tm_ * E_pad * (x_item + out_item)
                + (2 * tm_ * E_pad * c_item if has_mask else 0)
                + tm_ * H_pad * 4 + tm_ * E_pad * 4)

    use_ktiled = (tk is not None) or (weight_bytes > hw["resident_weight_bytes"])
    if not use_ktiled:
        tm_r = clamp_tm(tm if tm is not None else hw["resident_tm"])
        if resident_need(tm_r) > budget:
            use_ktiled = True

    flops = 4 * M * E_pad * H_pad

    if not use_ktiled:
        # ---------------- fully weight-resident path ----------------
        kernel = functools.partial(_ffn_kernel_resident, has_mask=has_mask,
                                   compute_dtype=compute_dtype)
        n_m = _cdiv(M, tm_r)
        vmem_limit = int(min(max(resident_need(tm_r) + (4 << 20), 32 << 20),
                             hw["vmem_limit_cap"]))
        wkw = dict(pipeline_mode=pl.Buffered(1)) if single_buf_w else {}
        in_specs = [
            pl.BlockSpec((tm_r, E_pad), lambda i: (i, 0)),             # x
            pl.BlockSpec((E_pad, H_pad), lambda i: (0, 0), **wkw),     # W1
            pl.BlockSpec((1, H_pad), lambda i: (0, 0), **wkw),         # b1
            pl.BlockSpec((H_pad, E_pad), lambda i: (0, 0), **wkw),     # W2
            pl.BlockSpec((1, E_pad), lambda i: (0, 0), **wkw),         # b2
        ]
        operands = [x2d, w1p, b1p, w2p, b2p]
        if has_mask:
            in_specs.append(pl.BlockSpec((tm_r, E_pad), lambda i: (i, 0)))
            operands.append(mask)
        bytes_accessed = (M * E_pad * (x_item + out_item) + weight_bytes
                          + (E_pad + H_pad) * 4
                          + (M * E_pad * c_item if has_mask else 0))
        cost = pl.CostEstimate(flops=int(flops), transcendentals=0,
                               bytes_accessed=int(bytes_accessed))
        out = pl.pallas_call(
            kernel,
            out_shape=jax.ShapeDtypeStruct((M, E_pad), out_dtype),
            grid_spec=pltpu.PrefetchScalarGridSpec(
                num_scalar_prefetch=0, grid=(n_m,),
                in_specs=in_specs,
                out_specs=pl.BlockSpec((tm_r, E_pad), lambda i: (i, 0))),
            compiler_params=pltpu.CompilerParams(
                dimension_semantics=("parallel",),
                vmem_limit_bytes=vmem_limit),
            cost_estimate=cost,
        )(*operands)
    else:
        # ---------------- hidden-dim (K) tiled accumulator path ----------------
        tk = 512 if tk is None else tk
        tk = min(_round_up(tk, 128), H_pad)
        H_k = _round_up(H_pad, tk)
        if H_k != H_pad:
            w1p = jnp.pad(w1p, ((0, 0), (0, H_k - H_pad)))
            w2p = jnp.pad(w2p, ((0, H_k - H_pad), (0, 0)))
            b1p = jnp.pad(b1p, ((0, 0), (0, H_k - H_pad)))
            H_pad = H_k
        n_k = H_pad // tk
        # Contiguous k-blocks of W1 for long-burst HBM DMA: (n_k, E_pad, tk).
        w1p = w1p.reshape(E_pad, n_k, tk).transpose(1, 0, 2)

        kernel = functools.partial(_ffn_kernel_ktiled, has_mask=has_mask,
                                   compute_dtype=compute_dtype)

        def ktiled_need(tm_):
            return (3 * 2 * E_pad * tk * c_item            # W1+W2 k-blocks, <=3 bufs
                    + 3 * (E_pad + tk) * 4                 # bias blocks
                    + 2 * tm_ * E_pad * (x_item + out_item)
                    + (2 * tm_ * E_pad * c_item if has_mask else 0)
                    + tm_ * E_pad * 4                      # f32 accumulator
                    + tm_ * tk * 4)                        # f32 hidden tile

        tm_k = clamp_tm(tm if tm is not None else hw["ktiled_tm"])
        while tm_k > 256 and ktiled_need(tm_k) > budget:
            tm_k = max(256, _round_up(tm_k // 2, 8))
        n_m = _cdiv(M, tm_k)
        vmem_limit = int(min(max(ktiled_need(tm_k) + (4 << 20), 32 << 20),
                             hw["vmem_limit_cap"]))

        wkw = dict(pipeline_mode=pl.Buffered(3)) if single_buf_w else {}
        in_specs = [
            pl.BlockSpec((tm_k, E_pad), lambda i, k: (i, 0)),              # x (resident over k)
            pl.BlockSpec((None, E_pad, tk), lambda i, k: (k, 0, 0), **wkw),  # W1 k-block
            pl.BlockSpec((1, tk), lambda i, k: (0, k)),                    # b1[k]
            pl.BlockSpec((tk, E_pad), lambda i, k: (k, 0), **wkw),         # W2[k,:]
            pl.BlockSpec((1, E_pad), lambda i, k: (0, 0)),                 # b2
        ]
        operands = [x2d, w1p, b1p, w2p, b2p]
        if has_mask:
            in_specs.append(pl.BlockSpec((tm_k, E_pad), lambda i, k: (i, 0)))
            operands.append(mask)
        bytes_accessed = (M * E_pad * (x_item + out_item)
                          + n_m * weight_bytes                  # weights re-streamed per m-tile
                          + n_m * (E_pad + H_pad) * 4
                          + (M * E_pad * c_item if has_mask else 0))
        cost = pl.CostEstimate(flops=int(flops), transcendentals=0,
                               bytes_accessed=int(bytes_accessed))
        out = pl.pallas_call(
            kernel,
            out_shape=jax.ShapeDtypeStruct((M, E_pad), out_dtype),
            grid_spec=pltpu.PrefetchScalarGridSpec(
                num_scalar_prefetch=0,
                grid=(n_m, n_k),                                # reduction axis last
                in_specs=in_specs,
                out_specs=pl.BlockSpec((tm_k, E_pad), lambda i, k: (i, 0)),
                scratch_shapes=[pltpu.VMEM((tm_k, E_pad), jnp.float32)]),
            compiler_params=pltpu.CompilerParams(
                dimension_semantics=("parallel", "arbitrary"),
                vmem_limit_bytes=vmem_limit),
            cost_estimate=cost,
        )(*operands)

    if feature_pad:
        out = out[:, :n_embd]
    return out.reshape(orig_shape)


# ------------------------------------------------------------------- helpers --
def init_params(key, n_embd, dtype=jnp.float32):
    """Deterministic init mirroring nn.Linear shapes (stored pre-transposed)."""
    hidden = 4 * n_embd
    k1, k2, k3, k4 = jax.random.split(key, 4)
    lim1 = 1.0 / jnp.sqrt(n_embd)
    lim2 = 1.0 / jnp.sqrt(hidden)
    w1 = jax.random.uniform(k1, (n_embd, hidden), dtype, -lim1, lim1)
    b1 = jax.random.uniform(k2, (hidden,), dtype, -lim1, lim1)
    w2 = jax.random.uniform(k3, (hidden, n_embd), dtype, -lim2, lim2)
    b2 = jax.random.uniform(k4, (n_embd,), dtype, -lim2, lim2)
    return w1, b1, w2, b2


def _reference_ffn(x, w1, b1, w2, b2, compute_dtype=jnp.bfloat16):
    """Pure-JAX reference emulating the kernel's bf16-MXU / f32-accumulate math."""
    E = x.shape[-1]
    x2d = x.reshape(-1, E).astype(compute_dtype)
    h = jnp.dot(x2d, w1.astype(compute_dtype),
                preferred_element_type=jnp.float32)
    h = jnp.maximum(h + b1.astype(jnp.float32), 0.0)
    y = jnp.dot(h.astype(compute_dtype), w2.astype(compute_dtype),
                preferred_element_type=jnp.float32)
    y = y + b2.astype(jnp.float32)
    return y.reshape(x.shape).astype(x.dtype)


if __name__ == "__main__":
    key = jax.random.PRNGKey(0)
    batch, seq = 2, 8

    # Case 1: resident-weight path (n_embd=32, internally padded lane-dense to 128).
    n_embd = 32
    kx1, kp1, kx2, kp2 = jax.random.split(key, 4)
    x = jax.random.normal(kx1, (batch, seq, n_embd), dtype=jnp.float32)
    w1, b1, w2, b2 = init_params(kp1, n_embd)
    y = feed_forward(x, w1, b1, w2, b2, dropout_p=0.2, training=False)
    y = jax.block_until_ready(y)
    ref = _reference_ffn(x, w1, b1, w2, b2)
    assert y.shape == x.shape and y.dtype == x.dtype
    assert jnp.allclose(y, ref, atol=1e-2, rtol=1e-2), "resident path mismatch"

    # Case 2: force the hidden-dim (K) tiled accumulator path (2 k-steps).
    n_embd2 = 64
    x2 = jax.random.normal(kx2, (batch, seq, n_embd2), dtype=jnp.float32)
    w1b, b1b, w2b, b2b = init_params(kp2, n_embd2)
    y2 = feed_forward(x2, w1b, b1b, w2b, b2b, dropout_p=0.2, training=False,
                      tk=128)
    y2 = jax.block_until_ready(y2)
    ref2 = _reference_ffn(x2, w1b, b1b, w2b, b2b)
    assert jnp.allclose(y2, ref2, atol=1e-2, rtol=1e-2), "k-tiled path mismatch"

    # Training-mode smoke test (inverted dropout via wrapper-generated keep mask).
    yt = feed_forward(x, w1, b1, w2, b2, dropout_p=0.2, training=True, seed=0)
    yt = jax.block_until_ready(yt)
    assert yt.shape == x.shape and jnp.all(jnp.isfinite(yt))

    print("KERNEL_OK")
</pallas_src>

<mosaic_0001>
module attributes {stable_mosaic.version = 11 : i64} {
  func.func @_ffn_kernel_resident(%arg0: i32, %arg1: memref<16x128xbf16, #tpu.memory_space<vmem>>, %arg2: memref<128x128xbf16, #tpu.memory_space<vmem>>, %arg3: memref<1x128xf32, #tpu.memory_space<vmem>>, %arg4: memref<128x128xbf16, #tpu.memory_space<vmem>>, %arg5: memref<1x128xf32, #tpu.memory_space<vmem>>, %arg6: memref<16x128xf32, #tpu.memory_space<vmem>>) attributes {dimension_semantics = [#tpu.dimension_semantics<parallel>], iteration_bounds = array<i64: 1>, scalar_prefetch = 0 : i64, scratch_operands = 0 : i64, tpu.core_type = #tpu.core_type<tc>, window_params = [{transform_indices = @transform_0, window_bounds = array<i64: 16, 128>}, {pipeline_mode = #tpu.pipeline_mode<synchronous>, transform_indices = @transform_1, window_bounds = array<i64: 128, 128>}, {pipeline_mode = #tpu.pipeline_mode<synchronous>, transform_indices = @transform_2, window_bounds = array<i64: 1, 128>}, {pipeline_mode = #tpu.pipeline_mode<synchronous>, transform_indices = @transform_3, window_bounds = array<i64: 128, 128>}, {pipeline_mode = #tpu.pipeline_mode<synchronous>, transform_indices = @transform_4, window_bounds = array<i64: 1, 128>}, {transform_indices = @transform_5, window_bounds = array<i64: 16, 128>}]} {
    %c0 = arith.constant 0 : index
    %c0_0 = arith.constant 0 : index
    %0 = vector.load %arg1[%c0, %c0_0] : memref<16x128xbf16, #tpu.memory_space<vmem>>, vector<16x128xbf16>
    %c0_1 = arith.constant 0 : index
    %c0_2 = arith.constant 0 : index
    %1 = vector.load %arg2[%c0_1, %c0_2] : memref<128x128xbf16, #tpu.memory_space<vmem>>, vector<128x128xbf16>
    %cst = arith.constant dense<0.000000e+00> : vector<16x128xf32>
    %2 = tpu.matmul %0, %1, %cst {dimension_numbers = #tpu.dot_dimension_numbers<[1], [0], [0], [1], [0, 0, 1, 1], [], []>} : vector<16x128xbf16>, vector<128x128xbf16>, vector<16x128xf32> -> vector<16x128xf32>
    %c0_3 = arith.constant 0 : index
    %c0_4 = arith.constant 0 : index
    %3 = vector.load %arg3[%c0_3, %c0_4] : memref<1x128xf32, #tpu.memory_space<vmem>>, vector<1x128xf32>
    %4 = vector.broadcast %3 : vector<1x128xf32> to vector<16x128xf32>
    %5 = arith.addf %2, %4 : vector<16x128xf32>
    %cst_5 = arith.constant 0.000000e+00 : f32
    %6 = vector.broadcast %cst_5 : f32 to vector<16x128xf32>
    %7 = arith.maximumf %5, %6 : vector<16x128xf32>
    %8 = arith.truncf %7 : vector<16x128xf32> to vector<16x128xbf16>
    %c0_6 = arith.constant 0 : index
    %c0_7 = arith.constant 0 : index
    %9 = vector.load %arg4[%c0_6, %c0_7] : memref<128x128xbf16, #tpu.memory_space<vmem>>, vector<128x128xbf16>
    %cst_8 = arith.constant dense<0.000000e+00> : vector<16x128xf32>
    %10 = tpu.matmul %8, %9, %cst_8 {dimension_numbers = #tpu.dot_dimension_numbers<[1], [0], [0], [1], [0, 0, 1, 1], [], []>} : vector<16x128xbf16>, vector<128x128xbf16>, vector<16x128xf32> -> vector<16x128xf32>
    %c0_9 = arith.constant 0 : index
    %c0_10 = arith.constant 0 : index
    %11 = vector.load %arg5[%c0_9, %c0_10] : memref<1x128xf32, #tpu.memory_space<vmem>>, vector<1x128xf32>
    %12 = vector.broadcast %11 : vector<1x128xf32> to vector<16x128xf32>
    %13 = arith.addf %10, %12 : vector<16x128xf32>
    %c0_11 = arith.constant 0 : index
    %c0_12 = arith.constant 0 : index
    %14 = vector.load %arg6[%c0_11, %c0_12] : memref<16x128xf32, #tpu.memory_space<vmem>>, vector<16x128xf32>
    tpu.vector_store %arg6[%c0_11, %c0_12], %13 {strides = array<i32>} : memref<16x128xf32, #tpu.memory_space<vmem>>, vector<16x128xf32>,
    return
  }
  func.func @transform_0(%arg0: i32) -> (i32, i32) {
    %c0_i32 = arith.constant 0 : i32
    %c0_i32_0 = arith.constant 0 : i32
    return %arg0, %c0_i32 : i32, i32
  }
  func.func @transform_1(%arg0: i32) -> (i32, i32) {
    %c0_i32 = arith.constant 0 : i32
    %c0_i32_0 = arith.constant 0 : i32
    %c0_i32_1 = arith.constant 0 : i32
    return %c0_i32, %c0_i32_0 : i32, i32
  }
  func.func @transform_2(%arg0: i32) -> (i32, i32) {
    %c0_i32 = arith.constant 0 : i32
    %c0_i32_0 = arith.constant 0 : i32
    %c0_i32_1 = arith.constant 0 : i32
    return %c0_i32, %c0_i32_0 : i32, i32
  }
  func.func @transform_3(%arg0: i32) -> (i32, i32) {
    %c0_i32 = arith.constant 0 : i32
    %c0_i32_0 = arith.constant 0 : i32
    %c0_i32_1 = arith.constant 0 : i32
    return %c0_i32, %c0_i32_0 : i32, i32
  }
  func.func @transform_4(%arg0: i32) -> (i32, i32) {
    %c0_i32 = arith.constant 0 : i32
    %c0_i32_0 = arith.constant 0 : i32
    %c0_i32_1 = arith.constant 0 : i32
    return %c0_i32, %c0_i32_0 : i32, i32
  }
  func.func @transform_5(%arg0: i32) -> (i32, i32) {
    %c0_i32 = arith.constant 0 : i32
    %c0_i32_0 = arith.constant 0 : i32
    return %arg0, %c0_i32 : i32, i32
  }
}

</mosaic_0001>

<bundles_post_ra>
// kernel: tpu_custom_call.1
= control target key start
LH: loop header
LB: loop body
LE: loop exit
PB: predicated region body
PF: predicated region fallthrough
CT: control target
= control target key end

     0   :  { %10 = vsyncpa [#allocation3], 0  ;;  %s626_s0 = inlined_call_operand.hbm [shape: bf16[16,128], index: 0, kind: input, shape index: {}]   ;;  %s627_s1 = inlined_call_operand.hbm [shape: bf16[128,128], index: 1, kind: input, shape index: {}]   ;;  %s628_s2 = inlined_call_operand.vmem [shape: f32[1,128], index: 2, kind: input, shape index: {}]   ;;  %s629_s3 = inlined_call_operand.hbm [shape: bf16[128,128], index: 3, kind: input, shape index: {}]   ;;  %s630_s4 = inlined_call_operand.vmem [shape: f32[1,128], index: 4, kind: input, shape index: {}]   ;;  %s631_s5 = inlined_call_operand.hbm [shape: f32[16,128], index: 5, kind: output, shape index: {}]  }
   0x1   :  { %11 = vsyncpa [#allocation6], 0 }
   0x2   :  { %12 = vsyncpa [#allocation4], 0  ;;  %s516_s18 = smov [#allocation5]   ;;  %s517_s20 = smov [#allocation2]  }
   0x3   :  { %s30_s19 = sshll.u32 %s516_s18, 4  ;;  %s18_s21 = sshll.u32 %s517_s20, 4  ;;  %s31_s19 = int_to_ptr.vmem [resolvable:$true] %s30_s19  ;;  %s556_s21 = int_to_ptr.vmem [resolvable:$true] %s18_s21 }
   0x4   :  { %s422_s24 = scalar_lea.hbm %s627_s1, 1024 }
   0x5   :  { %p423_p0 = scmp.ne.s32.totalorder %s627_s1, %s422_s24  ;;  %p426_p1 = scmp.lt.u32.totalorder %s422_s24, %s627_s1 }
   0x7   :  { %p428_p2 = pnand %p426_p1, %p423_p0 }
   0x9   :  { %431 = shalt.err (!%p428_p2)
}
   0xa   :  { %s432_s29 = scalar_lea.vmem %s31_s19, 1024  ;;  %p437_p4 = scmp.lt.s32.totalorder %s31_s19, %s31_s19 }
   0xb   :  { %p433_p3 = scmp.ne.s32.totalorder %s31_s19, %s432_s29  ;;  %p438_p5 = scmp.lt.s32.totalorder %s432_s29, %s432_s29 }
   0xd   :  { %p439_p6 = por %p438_p5, %p437_p4 }
   0xf   :  { %p440_p7 = pnand %p439_p6, %p433_p3 }
  0x11   :  { %443 = shalt.err (!%p440_p7)
}
  0x12   :  { %s518_s30 = smov 64   ;;  %s519_s6 = smov 4  }
  0x13   :  { %36 = dma.hbm_to_vmem [thread:$0]  %s627_s1, 1024, %s31_s19, [#allocation6], %s518_s30, %s518_s30, %s519_s6  }
  0x14   :  { %s444_s11 = scalar_lea.hbm %s626_s0, 128 }
  0x15   :  { %p445_p8 = scmp.ne.s32.totalorder %s626_s0, %s444_s11  ;;  %p448_p9 = scmp.lt.u32.totalorder %s444_s11, %s626_s0 }
  0x17   :  { %p450_p10 = pnand %p448_p9, %p445_p8 }
  0x19   :  { %453 = shalt.err (!%p450_p10)
}
  0x1a   :  { %s454_s16 = scalar_lea.vmem %s556_s21, 128  ;;  %p459_p12 = scmp.lt.s32.totalorder %s556_s21, %s556_s21 }
  0x1b   :  { %p455_p11 = scmp.ne.s32.totalorder %s556_s21, %s454_s16  ;;  %p460_p13 = scmp.lt.s32.totalorder %s454_s16, %s454_s16 }
  0x1d   :  { %p461_p0 = por %p460_p13, %p459_p12 }
  0x1f   :  { %p462_p1 = pnand %p461_p0, %p455_p11 }
  0x21   :  { %465 = shalt.err (!%p462_p1)
}
  0x22   :  { %24 = dma.hbm_to_vmem [thread:$0]  %s626_s0, 128, %s556_s21, [#allocation3], %s518_s30, %s518_s30, %s519_s6  }
  0x23   :  { %s520_s18 = smov [#allocation7]   ;;  %s466_s23 = scalar_lea.hbm %s629_s3, 1024 }
  0x24   :  { %s44_s19 = sshll.u32 %s520_s18, 4  ;;  %p467_p2 = scmp.ne.s32.totalorder %s629_s3, %s466_s23  ;;  %s45_s19 = int_to_ptr.vmem [resolvable:$true] %s44_s19 }
  0x25   :  { %p470_p3 = scmp.lt.u32.totalorder %s466_s23, %s629_s3 }
  0x27   :  { %p472_p4 = pnand %p470_p3, %p467_p2 }
  0x29   :  { %475 = shalt.err (!%p472_p4)
}
  0x2a   :  { %s476_s28 = scalar_lea.vmem %s45_s19, 1024  ;;  %p481_p6 = scmp.lt.s32.totalorder %s45_s19, %s45_s19 }
  0x2b   :  { %p477_p5 = scmp.ne.s32.totalorder %s45_s19, %s476_s28  ;;  %p482_p7 = scmp.lt.s32.totalorder %s476_s28, %s476_s28 }
  0x2d   :  { %p483_p8 = por %p482_p7, %p481_p6 }
  0x2f   :  { %p484_p9 = pnand %p483_p8, %p477_p5 }
  0x31   :  { %487 = shalt.err (!%p484_p9)
}
  0x32   :  { %50 = dma.hbm_to_vmem [thread:$0]  %s629_s3, 1024, %s45_s19, [#allocation6], %s518_s30, %s518_s30, %s519_s6  }
  0x33   :  { %510 = dma.done.wait [#allocation3], 128  }
  0x34   :  { %511 = vsyncadd [#allocation3], 4294967168 }
  0x35   :  { %512 = dma.done.wait [#allocation6], 2048  }
  0x36   :  { %513 = vsyncadd [#allocation6], 4294965248  ;;  %v521_v0 = vmov 0.0   ;;  %vm522_vm0 = vmmov 0   ;;  %v405_v1 = vld [vmem:[#allocation5] sm:$0xff]   ;;  %v406_v2 = vld [vmem:[#allocation5 + $0x8] sm:$0xff]  }
  0x37   :  { %355 = vmatprep.subr.bf16.mxu0 %v521_v0  ;;  %371 = vmatprep.mubr.msk.bf16.mxu0 %vm522_vm0, %v521_v0  ;;  %v407_v3 = vld [vmem:[#allocation5 + $0x10] sm:$0xff]   ;;  %v414_v4 = vld [vmem:[#allocation7] sm:$0xff]   ;;  %v408_v5 = vld [vmem:[#allocation5 + $0x18] sm:$0xff]   ;;  %s523_s7 = smov [#allocation8]  }
  0x38   :  { %375 = vmatprep.subr.bf16.mxu1 %v521_v0  ;;  %391 = vmatprep.mubr.msk.bf16.mxu1 %vm522_vm0, %v521_v0  ;;  %v415_v6 = vld [vmem:[#allocation7 + $0x8] sm:$0xff]   ;;  %v409_v7 = vld [vmem:[#allocation5 + $0x20] sm:$0xff]   ;;  %v416_v8 = vld [vmem:[#allocation7 + $0x10] sm:$0xff]   ;;  %s305_s8 = sshll.u32 %s523_s7, 4  ;;  %s306_s8 = int_to_ptr.vmem [resolvable:$true] %s305_s8 }
  0x39   :  { %356 = vmatpush3.bf16.msra.mxu0 %v405_v1  ;;  %376 = vmatpush3.bf16.msra.mxu1 %v414_v4  ;;  %v410_v9 = vld [vmem:[#allocation5 + $0x28] sm:$0xff]   ;;  %v417_v10 = vld [vmem:[#allocation7 + $0x18] sm:$0xff]   ;;  %v411_v11 = vld [vmem:[#allocation5 + $0x30] sm:$0xff]   ;;  %p493_p11 = scmp.lt.s32.totalorder %s306_s8, %s306_s8 }
  0x3a   :  { %357 = vmatprep.subr.bf16.mxu0 %v521_v0  ;;  %377 = vmatprep.subr.bf16.mxu1 %v521_v0  ;;  %v418_v12 = vld [vmem:[#allocation7 + $0x20] sm:$0xff]   ;;  %v412_v13 = vld [vmem:[#allocation5 + $0x38] sm:$0xff]   ;;  %v419_v14 = vld [vmem:[#allocation7 + $0x28] sm:$0xff]  }
  0x3b   :  { %v413_v15 = vld [vmem:[#allocation2] sm:$0xff]   ;;  %v420_v16 = vld [vmem:[#allocation7 + $0x30] sm:$0xff]  }
  0x3c   :  { %v421_v17 = vld [vmem:[#allocation7 + $0x38] sm:$0xff]  }
  0x3d   :  { %358 = vmatpush3.bf16.msra.mxu0 %v406_v2  ;;  %378 = vmatpush3.bf16.msra.mxu1 %v415_v6  ;;  %v318_v18 = vld [vmem:[%s628_s2] ss:$0 sm:$0xff]  ;;  %s488_s2 = scalar_lea.vmem %s306_s8, 256 }
  0x3e   :  { %359 = vmatprep.subr.bf16.mxu0 %v521_v0  ;;  %379 = vmatprep.subr.bf16.mxu1 %v521_v0  ;;  %v328_v28 = vld [vmem:[%s630_s4] ss:$0 sm:$0xff]  ;;  %p489_p10 = scmp.ne.s32.totalorder %s306_s8, %s488_s2  ;;  %p494_p12 = scmp.lt.s32.totalorder %s488_s2, %s488_s2 }
  0x40   :  { %p495_p13 = por %p494_p12, %p493_p11 }
  0x41   :  { %360 = vmatpush3.bf16.msra.mxu0 %v407_v3  ;;  %380 = vmatpush3.bf16.msra.mxu1 %v416_v8 }
  0x42   :  { %361 = vmatprep.subr.bf16.mxu0 %v521_v0  ;;  %381 = vmatprep.subr.bf16.mxu1 %v521_v0  ;;  %p496_p0 = pnand %p495_p13, %p489_p10 }
  0x45   :  { %362 = vmatpush3.bf16.msra.mxu0 %v408_v5  ;;  %382 = vmatpush3.bf16.msra.mxu1 %v417_v10 }
  0x46   :  { %363 = vmatprep.subr.bf16.mxu0 %v521_v0  ;;  %383 = vmatprep.subr.bf16.mxu1 %v521_v0 }
  0x49   :  { %364 = vmatpush3.bf16.msra.mxu0 %v409_v7  ;;  %384 = vmatpush3.bf16.msra.mxu1 %v418_v12 }
  0x4a   :  { %365 = vmatprep.subr.bf16.mxu0 %v521_v0  ;;  %385 = vmatprep.subr.bf16.mxu1 %v521_v0 }
  0x4d   :  { %366 = vmatpush3.bf16.msra.mxu0 %v410_v9  ;;  %386 = vmatpush3.bf16.msra.mxu1 %v419_v14 }
  0x4e   :  { %367 = vmatprep.subr.bf16.mxu0 %v521_v0  ;;  %387 = vmatprep.subr.bf16.mxu1 %v521_v0 }
  0x51   :  { %368 = vmatpush3.bf16.msra.mxu0 %v411_v11  ;;  %388 = vmatpush3.bf16.msra.mxu1 %v420_v16 }
  0x52   :  { %369 = vmatprep.subr.bf16.mxu0 %v521_v0  ;;  %389 = vmatprep.subr.bf16.mxu1 %v521_v0 }
  0x55   :  { %370 = vmatpush3.bf16.msra.mxu0 %v412_v13  ;;  %390 = vmatpush3.bf16.msra.mxu1 %v421_v17 }
  0x58   :  { %372 = vmatmul.mubr.bf16.vlgmr.msra.gmra.mrb[0].mxu0 %v413_v15 }
 0x12b   :  { %v176_v19 = vpop.f32.mrb[0].mxu0 }
 0x12c   :  { %v177_v20 = vadd.f32 %v318_v18, %v176_v19  ;;  %v373_v21 = vpop.f32.mrb[1].mxu0 }
 0x12d   :  { %v179_v22 = vpop.f32.mrb[2].mxu0 }
 0x12e   :  { %v180_v23 = vadd.f32 %v318_v18, %v179_v22  ;;  %v374_v24 = vpop.f32.mrb[3].mxu0  ;;  %v183_v25 = vmax.f32 %v177_v20, 0.0 }
 0x130   :  { %v184_v26 = vmax.f32 %v180_v23, 0.0 }
 0x132   :  { %v185_v27 = vpack.c.bf16 %v184_v26, %v183_v25 }
 0x134   :  { %392 = vmatmul.mubr.bf16.vlgmr.msra.gmra.mrb[0].mxu1 %v185_v27 }
 0x207   :  { %v291_v29 = vpop.f32.mrb[0].mxu1 }
 0x208   :  { %v292_v30 = vadd.f32 %v328_v28, %v291_v29  ;;  %v393_v31 = vpop.f32.mrb[1].mxu1 }
 0x209   :  { %v294_v32 = vpop.f32.mrb[2].mxu1 }
 0x20a   :  { %298 = vst [vmem:[#allocation8] sm:$0xff] %v292_v30  ;;  %v295_v33 = vadd.f32 %v328_v28, %v294_v32  ;;  %v394_v34 = vpop.f32.mrb[3].mxu1 }
 0x20c   :  { %299 = vst [vmem:[#allocation8 + $0x8] sm:$0xff] %v295_v33 }
 0x20d   :  { %499 = shalt.err (!%p496_p0)
}
 0x20e   :  { %s500_s10 = scalar_lea.hbm %s631_s5, 256 }
 0x20f   :  { %p501_p1 = scmp.ne.s32.totalorder %s631_s5, %s500_s10  ;;  %p504_p2 = scmp.lt.u32.totalorder %s500_s10, %s631_s5 }
 0x211   :  { %p506_p3 = pnand %p504_p2, %p501_p1 }
 0x213   :  { %509 = shalt.err (!%p506_p3)
}
 0x214   :  { %s524_s15 = smov 128   ;;  %s525_s16 = smov 8  }
 0x215   :  { %311 = dma.vmem_to_hbm [thread:$0]  %s306_s8, 256, %s631_s5, [#allocation4], %s524_s15, %s524_s15, %s525_s16  }
 0x216   :  { %514 = dma.done.wait [#allocation4], 256  }
 0x217   :  { %515 = vsyncadd [#allocation4], 4294967040 }
 0x218   :  { %315 = vsyncpa [#allocation3], 1 }
 0x219   :  { %316 = vsyncpa [#allocation6], 1 }
 0x21a   :  { %317 = vsyncpa [#allocation4], 1 }

</bundles_post_ra>
